<compile_context>
chip_gen: v5e
topology: v5e:2x2
jax: 0.10.0
libtpu: 0.0.40
codegen_flags: <defaults>
</compile_context>

<pallas_src>
import functools

import jax
import jax.numpy as jnp
from jax import lax
from jax.experimental import pallas as pl
from jax.experimental.pallas import tpu as pltpu


def _round_up(v, m):
    return ((v + m - 1) // m) * m


def _conv_bn_relu_kernel(x_ref, w_ref, b_ref, o_ref, *, taps, m):
    """One (row-block, C_out-tile) of one image per grid step.

    x_ref: (P, M_in, 3*C_in)  bf16  kw-folded activations (P=1 for stride 1,
                                    P=3 per-kh row planes for stride > 1)
    w_ref: (3, 3*C_in, TN)    bf16  per-kh weights, BN scale pre-folded
    b_ref: (1, TN)            f32   folded BN bias
    o_ref: (M, TN)            bf16  M = R * W_oc output positions
    """
    acc = None
    for kh, (plane, start) in enumerate(taps):            # static Python loop
        lhs = x_ref[plane, pl.ds(start, m), :]             # (M, 3*C_in) bf16
        part = jnp.dot(lhs, w_ref[kh],                     # MXU, K = 3*C_in
                       preferred_element_type=jnp.float32)
        acc = part if acc is None else acc + part          # only 2 f32 adds
    y = jnp.maximum(acc + b_ref[...], 0.0)                 # BN bias + ReLU
    o_ref[...] = y.astype(o_ref.dtype)                     # bf16, full-lane vst


@functools.partial(jax.jit, static_argnames=("stride",))
def mobilenet_conv_bn_relu(x, weight, gamma, beta, running_mean, running_var,
                           stride=1, eps=1e-5):
    """x: (N, C_in, H, W); weight: (C_out, C_in, 3, 3) -> (N, C_out, H_out, W_out)."""
    n, c_in, h, w = x.shape
    c_out = weight.shape[0]
    s = int(stride)
    h_out = (h + 2 - 3) // s + 1
    w_out = (w + 2 - 3) // s + 1

    w_oc = _round_up(w_out, 8)                  # sublane-aligned output columns
    c_out_pad = _round_up(c_out, 128)           # lane-dense output stores
    k_in = 3 * c_in                             # folded (kw, C_in) contraction depth
    tn = 256 if c_out_pad % 256 == 0 else 128   # C_out tile (MXU N)
    # TODO(synk): prefer tn=128 on v5e (128x128 MXU, single vst slot).

    # ---- row-block size: target M = R*W_oc ~ 1024, shrink if VMEM-tight ----
    r = max(1, min(h_out, -(-1024 // w_oc)))

    def vmem_est(r_):
        lane_in = _round_up(k_in, 128)                    # VMEM lane padding
        m_in_ = ((r_ + 2) * w_oc) if s == 1 else (3 * r_ * w_oc)
        xb = 2 * _round_up(m_in_, 16) * lane_in * 2       # dbl-buffered bf16 in
        wb = 2 * 3 * _round_up(k_in, 16) * tn * 2         # dbl-buffered weights
        ob = 2 * _round_up(r_ * w_oc, 16) * tn * 2        # dbl-buffered bf16 out
        acc = _round_up(r_ * w_oc, 8) * tn * 4            # f32 accumulator value
        return xb + wb + ob + acc + 2 * 8 * tn * 4

    try:
        cap = int(getattr(pltpu.get_tpu_info(), "vmem_capacity_bytes", 0))
    except Exception:
        cap = 0
    cap = cap or 64 * 1024 * 1024                         # conservative fallback
    budget = (cap * 85) // 100                            # ~54 MiB v7x, ~108 MiB v5e/v6e
    while r > 1 and vmem_est(r) > budget:
        r = max(1, r // 2)
    t_blocks = -(-h_out // r)
    m = r * w_oc

    # ---- activations: pad, fold kw into channels, bucket row blocks --------
    pad_r = (w_oc - 1) * s + 2 - w
    pad_b = (t_blocks * r - 1) * s + 2 - h
    x_nhwc = jnp.transpose(x, (0, 2, 3, 1)).astype(jnp.bfloat16)
    x_pad = jnp.pad(x_nhwc, ((0, 0), (1, pad_b), (1, pad_r), (0, 0)))
    wspan = (w_oc - 1) * s + 1
    # x_col[n, hh, q, kw*C_in + c] = x_pad[n, hh, q*s + kw, c]
    x_col = jnp.concatenate(
        [x_pad[:, :, kw:kw + wspan:s, :] for kw in range(3)], axis=-1)

    if s == 1:
        # contiguous rows + 2 halo rows per block; tap kh starts at row kh
        row_idx = jnp.arange(t_blocks)[:, None] * r + jnp.arange(r + 2)[None, :]
        x_blk = x_col[:, row_idx].reshape(n, t_blocks, 1, (r + 2) * w_oc, k_in)
        taps = tuple((0, kh * w_oc) for kh in range(3))
        p_planes, m_in = 1, (r + 2) * w_oc
    else:
        # strided rows: pre-gather one contiguous plane per kh tap
        row_idx = ((jnp.arange(t_blocks)[:, None, None] * r
                    + jnp.arange(r)[None, None, :]) * s
                   + jnp.arange(3)[None, :, None])          # (T, 3, R)
        x_blk = x_col[:, row_idx].reshape(n, t_blocks, 3, r * w_oc, k_in)
        taps = tuple((kh, 0) for kh in range(3))
        p_planes, m_in = 3, r * w_oc

    # ---- weights: (C_out, C_in, 3, 3) -> (3, 3*C_in, C_out_pad), BN-folded -
    scale = gamma.astype(jnp.float32) * lax.rsqrt(
        running_var.astype(jnp.float32) + eps)
    bias = beta.astype(jnp.float32) - running_mean.astype(jnp.float32) * scale
    w_r = jnp.transpose(weight, (2, 3, 1, 0)).astype(jnp.float32)
    w_r = w_r.reshape(3, k_in, c_out) * scale[None, None, :]   # fold BN scale
    w_k = jnp.pad(w_r, ((0, 0), (0, 0),
                        (0, c_out_pad - c_out))).astype(jnp.bfloat16)
    bias2 = jnp.pad(bias, (0, c_out_pad - c_out)).reshape(1, c_out_pad)

    kernel = functools.partial(_conv_bn_relu_kernel, taps=taps, m=m)

    out_flat = pl.pallas_call(
        kernel,
        out_shape=jax.ShapeDtypeStruct((n, t_blocks * m, c_out_pad),
                                       jnp.bfloat16),
        grid=(n, t_blocks, c_out_pad // tn),
        in_specs=[
            pl.BlockSpec((None, None, p_planes, m_in, k_in),
                         lambda b, t, j: (b, t, 0, 0, 0)),
            pl.BlockSpec((3, k_in, tn), lambda b, t, j: (0, 0, j)),
            pl.BlockSpec((1, tn), lambda b, t, j: (0, j)),
        ],
        out_specs=pl.BlockSpec((None, m, tn), lambda b, t, j: (b, t, j)),
        compiler_params=pltpu.CompilerParams(
            dimension_semantics=("parallel", "parallel", "arbitrary"),
            vmem_limit_bytes=int(budget)),
    )(x_blk, w_k, bias2)

    out = out_flat.reshape(n, t_blocks * r, w_oc, c_out_pad)
    out = out[:, :h_out, :w_out, :c_out]          # drop row/col/channel padding
    # NOTE: NCHW f32 kept to match the PyTorch module; an NHWC/bf16 consumer
    # can skip this transpose + cast (saves a full pass over the output).
    return jnp.transpose(out, (0, 3, 1, 2)).astype(jnp.float32)


def _reference(x, weight, gamma, beta, running_mean, running_var, stride, eps=1e-5):
    """Plain-JAX f32 reference (lax conv + BN + ReLU) for validation."""
    y = lax.conv_general_dilated(
        x.astype(jnp.float32), weight.astype(jnp.float32),
        window_strides=(stride, stride), padding=((1, 1), (1, 1)),
        dimension_numbers=("NCHW", "OIHW", "NCHW"))
    scale = gamma / jnp.sqrt(running_var + eps)
    bias = beta - running_mean * scale
    y = y * scale[None, :, None, None] + bias[None, :, None, None]
    return jnp.maximum(y, 0.0)


if __name__ == "__main__":
    key = jax.random.PRNGKey(0)
    k_x, k_w, k_g, k_b, k_m, k_v = jax.random.split(key, 6)

    batch, in_channels, out_channels, spatial = 2, 4, 8, 16
    x = jax.random.normal(k_x, (batch, in_channels, spatial, spatial), jnp.float32)
    weight = 0.1 * jax.random.normal(k_w, (out_channels, in_channels, 3, 3),
                                     jnp.float32)
    gamma = 1.0 + 0.1 * jax.random.normal(k_g, (out_channels,), jnp.float32)
    beta = 0.1 * jax.random.normal(k_b, (out_channels,), jnp.float32)
    running_mean = 0.1 * jax.random.normal(k_m, (out_channels,), jnp.float32)
    running_var = jnp.abs(jax.random.normal(k_v, (out_channels,), jnp.float32)) + 0.5

    ok = True
    for stride in (1, 2):
        out = mobilenet_conv_bn_relu(
            x, weight, gamma, beta, running_mean, running_var, stride=stride)
        out = jax.block_until_ready(out)
        ref = _reference(x, weight, gamma, beta, running_mean, running_var, stride)
        # Tolerance accounts for bf16 conv operands / bf16 output vs f32 ref.
        if out.shape != ref.shape or not jnp.allclose(out, ref, atol=5e-2, rtol=5e-2):
            ok = False

    print("KERNEL_OK" if ok else "KERNEL_MISMATCH")
</pallas_src>

<mosaic_0001>
module attributes {stable_mosaic.version = 11 : i64} {
  func.func @_conv_bn_relu_kernel(%arg0: i32, %arg1: i32, %arg2: i32, %arg3: memref<1x1x1x288x12xbf16, #tpu.memory_space<vmem>>, %arg4: memref<3x12x128xbf16, #tpu.memory_space<vmem>>, %arg5: memref<1x128xf32, #tpu.memory_space<vmem>>, %arg6: memref<1x256x128xbf16, #tpu.memory_space<vmem>>) attributes {dimension_semantics = [#tpu.dimension_semantics<parallel>, #tpu.dimension_semantics<parallel>, #tpu.dimension_semantics<arbitrary>], iteration_bounds = array<i64: 2, 1, 1>, scalar_prefetch = 0 : i64, scratch_operands = 0 : i64, tpu.core_type = #tpu.core_type<tc>, window_params = [{transform_indices = @transform_0, window_bounds = array<i64: 1, 1, 1, 288, 12>}, {transform_indices = @transform_1, window_bounds = array<i64: 3, 12, 128>}, {transform_indices = @transform_2, window_bounds = array<i64: 1, 128>}, {transform_indices = @transform_3, window_bounds = array<i64: 1, 256, 128>}]} {
    %c0 = arith.constant 0 : index
    %c0_0 = arith.constant 0 : index
    %c0_1 = arith.constant 0 : index
    %c0_2 = arith.constant 0 : index
    %c0_3 = arith.constant 0 : index
    %0 = vector.load %arg3[%c0, %c0_0, %c0_1, %c0_2, %c0_3] : memref<1x1x1x288x12xbf16, #tpu.memory_space<vmem>>, vector<1x1x1x256x12xbf16>
    %1 = vector.shape_cast %0 : vector<1x1x1x256x12xbf16> to vector<256x12xbf16>
    %c0_4 = arith.constant 0 : index
    %c0_5 = arith.constant 0 : index
    %c0_6 = arith.constant 0 : index
    %2 = vector.load %arg4[%c0_4, %c0_5, %c0_6] : memref<3x12x128xbf16, #tpu.memory_space<vmem>>, vector<1x12x128xbf16>
    %3 = vector.shape_cast %2 : vector<1x12x128xbf16> to vector<12x128xbf16>
    %cst = arith.constant dense<0.000000e+00> : vector<256x128xf32>
    %4 = tpu.matmul %1, %3, %cst {dimension_numbers = #tpu.dot_dimension_numbers<[1], [0], [0], [1], [0, 0, 1, 1], [], []>} : vector<256x12xbf16>, vector<12x128xbf16>, vector<256x128xf32> -> vector<256x128xf32>
    %c0_7 = arith.constant 0 : index
    %c0_8 = arith.constant 0 : index
    %c0_9 = arith.constant 0 : index
    %c16 = arith.constant 16 : index
    %c0_10 = arith.constant 0 : index
    %5 = vector.load %arg3[%c0_7, %c0_8, %c0_9, %c16, %c0_10] : memref<1x1x1x288x12xbf16, #tpu.memory_space<vmem>>, vector<1x1x1x256x12xbf16>
    %6 = vector.shape_cast %5 : vector<1x1x1x256x12xbf16> to vector<256x12xbf16>
    %c1 = arith.constant 1 : index
    %c0_11 = arith.constant 0 : index
    %c0_12 = arith.constant 0 : index
    %7 = vector.load %arg4[%c1, %c0_11, %c0_12] : memref<3x12x128xbf16, #tpu.memory_space<vmem>>, vector<1x12x128xbf16>
    %8 = vector.shape_cast %7 : vector<1x12x128xbf16> to vector<12x128xbf16>
    %cst_13 = arith.constant dense<0.000000e+00> : vector<256x128xf32>
    %9 = tpu.matmul %6, %8, %cst_13 {dimension_numbers = #tpu.dot_dimension_numbers<[1], [0], [0], [1], [0, 0, 1, 1], [], []>} : vector<256x12xbf16>, vector<12x128xbf16>, vector<256x128xf32> -> vector<256x128xf32>
    %10 = arith.addf %4, %9 : vector<256x128xf32>
    %c0_14 = arith.constant 0 : index
    %c0_15 = arith.constant 0 : index
    %c0_16 = arith.constant 0 : index
    %c32 = arith.constant 32 : index
    %c0_17 = arith.constant 0 : index
    %11 = vector.load %arg3[%c0_14, %c0_15, %c0_16, %c32, %c0_17] : memref<1x1x1x288x12xbf16, #tpu.memory_space<vmem>>, vector<1x1x1x256x12xbf16>
    %12 = vector.shape_cast %11 : vector<1x1x1x256x12xbf16> to vector<256x12xbf16>
    %c2 = arith.constant 2 : index
    %c0_18 = arith.constant 0 : index
    %c0_19 = arith.constant 0 : index
    %13 = vector.load %arg4[%c2, %c0_18, %c0_19] : memref<3x12x128xbf16, #tpu.memory_space<vmem>>, vector<1x12x128xbf16>
    %14 = vector.shape_cast %13 : vector<1x12x128xbf16> to vector<12x128xbf16>
    %cst_20 = arith.constant dense<0.000000e+00> : vector<256x128xf32>
    %15 = tpu.matmul %12, %14, %cst_20 {dimension_numbers = #tpu.dot_dimension_numbers<[1], [0], [0], [1], [0, 0, 1, 1], [], []>} : vector<256x12xbf16>, vector<12x128xbf16>, vector<256x128xf32> -> vector<256x128xf32>
    %16 = arith.addf %10, %15 : vector<256x128xf32>
    %c0_21 = arith.constant 0 : index
    %c0_22 = arith.constant 0 : index
    %17 = vector.load %arg5[%c0_21, %c0_22] : memref<1x128xf32, #tpu.memory_space<vmem>>, vector<1x128xf32>
    %18 = vector.broadcast %17 : vector<1x128xf32> to vector<256x128xf32>
    %19 = arith.addf %16, %18 : vector<256x128xf32>
    %cst_23 = arith.constant 0.000000e+00 : f32
    %20 = vector.broadcast %cst_23 : f32 to vector<256x128xf32>
    %21 = arith.maximumf %19, %20 : vector<256x128xf32>
    %22 = arith.truncf %21 : vector<256x128xf32> to vector<256x128xbf16>
    %c0_24 = arith.constant 0 : index
    %c0_25 = arith.constant 0 : index
    %c0_26 = arith.constant 0 : index
    %23 = vector.load %arg6[%c0_24, %c0_25, %c0_26] : memref<1x256x128xbf16, #tpu.memory_space<vmem>>, vector<1x256x128xbf16>
    %24 = vector.shape_cast %23 : vector<1x256x128xbf16> to vector<256x128xbf16>
    %25 = vector.shape_cast %22 : vector<256x128xbf16> to vector<1x256x128xbf16>
    tpu.vector_store %arg6[%c0_24, %c0_25, %c0_26], %25 {strides = array<i32>} : memref<1x256x128xbf16, #tpu.memory_space<vmem>>, vector<1x256x128xbf16>,
    return
  }
  func.func @transform_0(%arg0: i32, %arg1: i32, %arg2: i32) -> (i32, i32, i32, i32, i32) {
    %c0_i32 = arith.constant 0 : i32
    %c0_i32_0 = arith.constant 0 : i32
    %c0_i32_1 = arith.constant 0 : i32
    %c0_i32_2 = arith.constant 0 : i32
    return %arg0, %arg1, %c0_i32, %c0_i32_0, %c0_i32_1 : i32, i32, i32, i32, i32
  }
  func.func @transform_1(%arg0: i32, %arg1: i32, %arg2: i32) -> (i32, i32, i32) {
    %c0_i32 = arith.constant 0 : i32
    %c0_i32_0 = arith.constant 0 : i32
    %c0_i32_1 = arith.constant 0 : i32
    return %c0_i32, %c0_i32_0, %arg2 : i32, i32, i32
  }
  func.func @transform_2(%arg0: i32, %arg1: i32, %arg2: i32) -> (i32, i32) {
    %c0_i32 = arith.constant 0 : i32
    %c0_i32_0 = arith.constant 0 : i32
    return %c0_i32, %arg2 : i32, i32
  }
  func.func @transform_3(%arg0: i32, %arg1: i32, %arg2: i32) -> (i32, i32, i32) {
    %c0_i32 = arith.constant 0 : i32
    return %arg0, %arg1, %arg2 : i32, i32, i32
  }
}

</mosaic_0001>

<bundles_post_ra>
// kernel: mobilenet_conv_bn_relu.1
= control target key start
LH: loop header
LB: loop body
LE: loop exit
PB: predicated region body
PF: predicated region fallthrough
CT: control target
= control target key end

     0   :  { %s1593_s12 = smov 0   ;;  %s1595_s13 = smov 0   ;;  %s1841_s0 = inlined_call_operand.vmem [shape: bf16[2,1,1,288,12], index: 0, kind: input, shape index: {}]   ;;  %s1842_s1 = inlined_call_operand.vmem [shape: bf16[3,12,128], index: 1, kind: input, shape index: {}]   ;;  %s1843_s2 = inlined_call_operand.vmem [shape: f32[1,128], index: 2, kind: input, shape index: {}]   ;;  %s1844_s3 = inlined_call_operand.vmem [shape: bf16[2,256,128], index: 3, kind: output, shape index: {}]  }
   0x1   :  { %s1597_s14 = smov 0  }
   0x2 LB: > { %s32_s15 = sadd.s32 1, %s1567_s13  ;;  %p1186_p0 = scmp.ge.s32.totalorder %s1571_s14, 1  ;;  %s1571_s14 = sphi %s1597_s14, %s13_s14   ;;  %s1567_s13 = sphi %s1595_s13, %s1846_s13   ;;  %s1563_s12 = sphi %s1593_s12, %s1845_s12  }
   0x3   : > { %p34_p1 = scmp.ge.s32.totalorder %s32_s15, 2  ;;  %p183_p2 = scmp.lt.s32.totalorder %s1571_s14, 3 }
   0x5   : > { %s1848_s15 = smov (%p34_p1, %s32_s15), 0  ;;  %p184_p3 = pnand %p1186_p0, %p183_p2 }
   0x6   : > { %p225_p4 = scmp.lt.s32.totalorder (!%p184_p3), %s1563_s12, 1 }
   0x7   : > { %187 = sbr.rel (%p184_p3) target bundleno = 346 (0x15a), region = 32 }
   0xc   : > { %v1258_v0 = vld [vmem:[%s1842_s1 + $0x8] sm:$0xf]  ;;  %v1407_v1 = vld [vmem:[%s1842_s1 + $0x8] sm:$0x30]  ;;  %vm428_vm0 = vcmask 1045504   ;;  %s1850_s12 = smov (!%p225_p4, %s1563_s12), 1 }
   0xd   : > { %v1259_v2 = vor.u32 %v1407_v1, %v1258_v0  ;;  %v1282_v3 = vld [vmem:[%s1842_s1] sm:$0xf]  ;;  %v1405_v4 = vld [vmem:[%s1842_s1] sm:$0x30]  ;;  %v1368_v5 = vld [vmem:[%s1842_s1 + $0x10] sm:$0xf] }
   0xe   : > { %v1283_v6 = vor.u32 %v1405_v4, %v1282_v3  ;;  %v1424_v7 = vld [vmem:[%s1842_s1 + $0x10] sm:$0x30]  ;;  %s1523_s28 = smul.u32 144, %s1850_s12  ;;  %vm379_vm1 = vcmask 97280   ;;  %v1709_v45 = vld [vmem:[%s1843_s2] ss:$0 sm:$0xff] }
   0xf   : > { %v430_v8 = vsel %vm428_vm0, %v1259_v2, 0  ;;  %v1369_v9 = vor.u32 %v1424_v7, %v1368_v5  ;;  %s1388_s7 = sshll.u32 %s1850_s12, 7 }
  0x10   : > { %439 = vmatpush.bf16.msra.mxu0 %v430_v8  ;;  %1520 = vmatpush.bf16.msra.mxu3 %v430_v8  ;;  %v535_v10 = vsel %vm428_vm0, %v1283_v6, 0  ;;  %s1638_s4 = scalar_lea.vmem %s1841_s0, %s1523_s28  ;;  %s1726_s10 = scalar_lea.vmem %s1844_s3, %s1388_s7 }
  0x11   : > { %544 = vmatpush.bf16.msra.mxu1 %v535_v10  ;;  %v795_v11 = vsel %vm428_vm0, %v1369_v9, 0  ;;  %v1390_v12 = vld [vmem:[%s1638_s4 + $0x8] sm:$0xff]  ;;  %v1389_v14 = vld [vmem:[%s1638_s4] sm:$0xff]  ;;  %v1408_v15 = vld [vmem:[%s1638_s4 + $0x10] sm:$0xff] }
  0x12   : > { %804 = vmatpush.bf16.msra.mxu2 %v795_v11  ;;  %v1402_v13 = vld [vmem:[%s1638_s4 + $0x68] sm:$0xff]  ;;  %v1391_v16 = vld [vmem:[%s1638_s4 + $0x10] sm:$0xff]  ;;  %v1409_v18 = vld [vmem:[%s1638_s4 + $0x18] sm:$0xff] }
  0x13   : > { %1260 = vmatmul.msk.bf16.vlgmr.msra.gmra.mxu0 %vm379_vm1, %v1390_v12  ;;  %1272 = vmatmul.msk.bf16.vlgmr.msra.gmra.mxu3 %vm379_vm1, %v1402_v13  ;;  %v1403_v17 = vld [vmem:[%s1638_s4 + $0x70] sm:$0xff]  ;;  %v1392_v19 = vld [vmem:[%s1638_s4 + $0x18] sm:$0xff]  ;;  %v1410_v21 = vld [vmem:[%s1638_s4 + $0x20] sm:$0xff] }
  0x14   : > { %1521 = vmatpush.bf16.msrb.mxu3 %v535_v10  ;;  %1284 = vmatmul.msk.bf16.vlgmr.msra.gmra.mxu1 %vm379_vm1, %v1389_v14  ;;  %v1404_v20 = vld [vmem:[%s1638_s4 + $0x78] sm:$0xff]  ;;  %v1393_v22 = vld [vmem:[%s1638_s4 + $0x20] sm:$0xff]  ;;  %v1411_v24 = vld [vmem:[%s1638_s4 + $0x28] sm:$0xff] }
  0x15   : > { %1370 = vmatmul.msk.bf16.vlgmr.msra.gmra.mxu2 %vm379_vm1, %v1408_v15  ;;  %v1406_v23 = vld [vmem:[%s1638_s4 + $0x80] sm:$0xff]  ;;  %v1394_v25 = vld [vmem:[%s1638_s4 + $0x28] sm:$0xff]  ;;  %v1412_v27 = vld [vmem:[%s1638_s4 + $0x30] sm:$0xff] }
  0x16   : > { %v1671_v26 = vld [vmem:[%s1638_s4 + $0x60] sm:$0xff]  ;;  %v1395_v28 = vld [vmem:[%s1638_s4 + $0x30] sm:$0xff]  ;;  %v1413_v29 = vld [vmem:[%s1638_s4 + $0x38] sm:$0xff] }
  0x17   : > { %v1396_v30 = vld [vmem:[%s1638_s4 + $0x38] sm:$0xff]  ;;  %v1414_v31 = vld [vmem:[%s1638_s4 + $0x40] sm:$0xff]  ;;  %v1415_v33 = vld [vmem:[%s1638_s4 + $0x48] sm:$0xff] }
  0x18   : > { %1522 = vmatpush.bf16.msra.mxu3 %v795_v11  ;;  %v1397_v32 = vld [vmem:[%s1638_s4 + $0x40] sm:$0xff]  ;;  %v1398_v34 = vld [vmem:[%s1638_s4 + $0x48] sm:$0xff]  ;;  %v1420_v35 = vld [vmem:[%s1638_s4 + $0x70] sm:$0xff] }
  0x19   : > { %v1416_v37 = vld [vmem:[%s1638_s4 + $0x50] sm:$0xff]  ;;  %v1421_v50 = vld [vmem:[%s1638_s4 + $0x78] sm:$0xff]  ;;  %v1422_v6 = vld [vmem:[%s1638_s4 + $0x80] sm:$0xff] }
  0x1a   : > { %v1399_v49 = vld [vmem:[%s1638_s4 + $0x50] sm:$0xff]  ;;  %v1417_v54 = vld [vmem:[%s1638_s4 + $0x58] sm:$0xff]  ;;  %v1418_v10 = vld [vmem:[%s1638_s4 + $0x60] sm:$0xff] }
  0x1b   : > { %v1400_v5 = vld [vmem:[%s1638_s4 + $0x58] sm:$0xff] }
  0x23   : > { %1261 = vmatmul.msk.bf16.gmra.mxu0 %vm379_vm1, %v1391_v16  ;;  %1273 = vmatmul.msk.bf16.gmra.mxu3 %vm379_vm1, %v1403_v17 }
  0x24   : > { %1285 = vmatmul.msk.bf16.gmra.mxu1 %vm379_vm1, %v1390_v12 }
  0x25   : > { %1371 = vmatmul.msk.bf16.gmra.mxu2 %vm379_vm1, %v1409_v18 }
  0x33   : > { %1262 = vmatmul.msk.bf16.gmra.mxu0 %vm379_vm1, %v1392_v19  ;;  %1274 = vmatmul.msk.bf16.gmra.mxu3 %vm379_vm1, %v1404_v20 }
  0x34   : > { %1286 = vmatmul.msk.bf16.gmra.mxu1 %vm379_vm1, %v1391_v16 }
  0x35   : > { %1372 = vmatmul.msk.bf16.gmra.mxu2 %vm379_vm1, %v1410_v21 }
  0x43   : > { %1263 = vmatmul.msk.bf16.gmra.mxu0 %vm379_vm1, %v1393_v22  ;;  %1275 = vmatmul.msk.bf16.gmra.mxu3 %vm379_vm1, %v1406_v23 }
  0x44   : > { %1287 = vmatmul.msk.bf16.gmra.mxu1 %vm379_vm1, %v1392_v19 }
  0x45   : > { %1373 = vmatmul.msk.bf16.gmra.mxu2 %vm379_vm1, %v1411_v24 }
  0x53   : > { %1264 = vmatmul.msk.bf16.gmra.mxu0 %vm379_vm1, %v1394_v25  ;;  %1296 = vmatmul.msk.bf16.vlgmr.msrb.gmra.mxu3 %vm379_vm1, %v1671_v26 }
  0x54   : > { %1288 = vmatmul.msk.bf16.gmra.mxu1 %vm379_vm1, %v1393_v22 }
  0x55   : > { %1374 = vmatmul.msk.bf16.gmra.mxu2 %vm379_vm1, %v1412_v27 }
  0x63   : > { %1265 = vmatmul.msk.bf16.gmra.mxu0 %vm379_vm1, %v1395_v28  ;;  %1297 = vmatmul.msk.bf16.gmra.mxu3 %vm379_vm1, %v1402_v13 }
  0x64   : > { %1289 = vmatmul.msk.bf16.gmra.mxu1 %vm379_vm1, %v1394_v25  ;;  %v1423_v25 = vld [vmem:[%s1638_s4 + $0x88] sm:$0xff] }
  0x65   : > { %1375 = vmatmul.msk.bf16.gmra.mxu2 %vm379_vm1, %v1413_v29 }
  0x73   : > { %1266 = vmatmul.msk.bf16.gmra.mxu0 %vm379_vm1, %v1396_v30  ;;  %1298 = vmatmul.msk.bf16.gmra.mxu3 %vm379_vm1, %v1403_v17 }
  0x74   : > { %1290 = vmatmul.msk.bf16.gmra.mxu1 %vm379_vm1, %v1395_v28 }
  0x75   : > { %1376 = vmatmul.msk.bf16.gmra.mxu2 %vm379_vm1, %v1414_v31 }
  0x83   : > { %1267 = vmatmul.msk.bf16.gmra.mxu0 %vm379_vm1, %v1397_v32  ;;  %1299 = vmatmul.msk.bf16.gmra.mxu3 %vm379_vm1, %v1404_v20 }
  0x84   : > { %1291 = vmatmul.msk.bf16.gmra.mxu1 %vm379_vm1, %v1396_v30  ;;  %v1419_v30 = vld [vmem:[%s1638_s4 + $0x68] sm:$0xff] }
  0x85   : > { %1377 = vmatmul.msk.bf16.gmra.mxu2 %vm379_vm1, %v1415_v33 }
  0x90   : > { %v441_v36 = vpop.f32.mrf.mxu0 }
  0x91   : > { %v546_v38 = vpop.f32.mrf.mxu1 }
  0x92   : > { %v547_v41 = vadd.f32 %v546_v38, %v441_v36 }
  0x93   : > { %1268 = vmatmul.msk.bf16.gmra.mxu0 %vm379_vm1, %v1398_v34  ;;  %1382 = vmatmul.msk.bf16.vlgmr.msra.gmra.mxu3 %vm379_vm1, %v1420_v35 }
  0x94   : > { %1292 = vmatmul.msk.bf16.gmra.mxu1 %vm379_vm1, %v1397_v32 }
  0x95   : > { %1378 = vmatmul.msk.bf16.gmra.mxu2 %vm379_vm1, %v1416_v37 }
  0x96   : > { %v1704_v39 = vpop.f32.mrf.mxu3 }
  0x98   : > { %v806_v40 = vpop.f32.mrf.mxu2  ;;  %v443_v42 = vpop.f32.mrf.mxu0 }
  0x99   : > { %v548_v43 = vpop.f32.mrf.mxu1  ;;  %v886_v44 = vadd.f32 %v806_v40, %v547_v41 }
  0x9a   : > { %v549_v46 = vadd.f32 %v548_v43, %v443_v42 }
  0x9b   : > { %v922_v51 = vadd.f32 %v1709_v45, %v886_v44 }
  0x9d   : > { %v954_v57 = vmax.f32 %v922_v51, 0.0 }
  0x9e   : > { %v1711_v47 = vpop.f32.mrf.mxu3 }
  0xa0   : > { %v808_v48 = vpop.f32.mrf.mxu2  ;;  %v446_v53 = vpop.f32.mrf.mxu0 }
  0xa1   : > { %v887_v52 = vadd.f32 %v808_v48, %v549_v46  ;;  %v551_v55 = vpop.f32.mrf.mxu1 }
  0xa2   : > { %v552_v62 = vadd.f32 %v551_v55, %v446_v53 }
  0xa3   : > { %v923_v56 = vadd.f32 %v1709_v45, %v887_v52  ;;  %1269 = vmatmul.msk.bf16.gmra.mxu0 %vm379_vm1, %v1399_v49  ;;  %1383 = vmatmul.msk.bf16.gmra.mxu3 %vm379_vm1, %v1421_v50 }
  0xa4   : > { %1293 = vmatmul.msk.bf16.gmra.mxu1 %vm379_vm1, %v1398_v34 }
  0xa5   : > { %v955_v58 = vmax.f32 %v923_v56, 0.0  ;;  %1379 = vmatmul.msk.bf16.gmra.mxu2 %vm379_vm1, %v1417_v54 }
  0xa6   : > { %v1728_v60 = vpop.f32.mrf.mxu3 }
  0xa7   : > { %v1428_v59 = vpack.c.bf16 %v955_v58, %v954_v57 }
  0xa8   : > { %v811_v61 = vpop.f32.mrf.mxu2  ;;  %v448_v63 = vpop.f32.mrf.mxu0 }
  0xa9   : > { %1429 = vst [vmem:[%s1726_s10] sm:$0xff] %v1428_v59   ;;  %v553_v0 = vpop.f32.mrf.mxu1  ;;  %v888_v1 = vadd.f32 %v811_v61, %v552_v62 }
  0xaa   : > { %v554_v2 = vadd.f32 %v553_v0, %v448_v63 }
  0xab   : > { %v924_v7 = vadd.f32 %v1709_v45, %v888_v1 }
  0xad   : > { %v956_v13 = vmax.f32 %v924_v7, 0.0 }
  0xae   : > { %v1731_v3 = vpop.f32.mrf.mxu3 }
  0xb0   : > { %v813_v4 = vpop.f32.mrf.mxu2  ;;  %v451_v9 = vpop.f32.mrf.mxu0 }
  0xb1   : > { %v889_v8 = vadd.f32 %v813_v4, %v554_v2  ;;  %v556_v11 = vpop.f32.mrf.mxu1 }
  0xb2   : > { %v557_v18 = vadd.f32 %v556_v11, %v451_v9 }
  0xb3   : > { %v925_v12 = vadd.f32 %v1709_v45, %v889_v8  ;;  %1270 = vmatmul.msk.bf16.gmra.mxu0 %vm379_vm1, %v1400_v5  ;;  %1384 = vmatmul.msk.bf16.gmra.mxu3 %vm379_vm1, %v1422_v6 }
  0xb4   : > { %1294 = vmatmul.msk.bf16.gmra.mxu1 %vm379_vm1, %v1399_v49 }
  0xb5   : > { %v957_v14 = vmax.f32 %v925_v12, 0.0  ;;  %1380 = vmatmul.msk.bf16.gmra.mxu2 %vm379_vm1, %v1418_v10 }
  0xb6   : > { %v1742_v16 = vpop.f32.mrf.mxu3 }
  0xb7   : > { %v1433_v15 = vpack.c.bf16 %v957_v14, %v956_v13 }
  0xb8   : > { %v816_v17 = vpop.f32.mrf.mxu2  ;;  %v453_v19 = vpop.f32.mrf.mxu0 }
  0xb9   : > { %1505 = vst [vmem:[%s1726_s10 + $0x8] sm:$0xff] %v1433_v15   ;;  %v558_v20 = vpop.f32.mrf.mxu1  ;;  %v890_v21 = vadd.f32 %v816_v17, %v557_v18 }
  0xba   : > { %v559_v22 = vadd.f32 %v558_v20, %v453_v19 }
  0xbb   : > { %v926_v27 = vadd.f32 %v1709_v45, %v890_v21 }
  0xbd   : > { %v958_v33 = vmax.f32 %v926_v27, 0.0 }
  0xbe   : > { %v1745_v23 = vpop.f32.mrf.mxu3 }
  0xc0   : > { %v818_v24 = vpop.f32.mrf.mxu2  ;;  %v456_v29 = vpop.f32.mrf.mxu0 }
  0xc1   : > { %v891_v28 = vadd.f32 %v818_v24, %v559_v22  ;;  %v561_v31 = vpop.f32.mrf.mxu1 }
  0xc2   : > { %v562_v38 = vadd.f32 %v561_v31, %v456_v29 }
  0xc3   : > { %v927_v32 = vadd.f32 %v1709_v45, %v891_v28  ;;  %1271 = vmatmul.msk.bf16.gmra.mxu0 %vm379_vm1, %v1671_v26  ;;  %1385 = vmatmul.msk.bf16.gmra.mxu3 %vm379_vm1, %v1423_v25 }
  0xc4   : > { %1295 = vmatmul.msk.bf16.gmra.mxu1 %vm379_vm1, %v1400_v5 }
  0xc5   : > { %v959_v34 = vmax.f32 %v927_v32, 0.0  ;;  %1381 = vmatmul.msk.bf16.gmra.mxu2 %vm379_vm1, %v1419_v30 }
  0xc6   : > { %v1756_v36 = vpop.f32.mrf.mxu3 }
  0xc7   : > { %v1438_v35 = vpack.c.bf16 %v959_v34, %v958_v33 }
  0xc8   : > { %v821_v37 = vpop.f32.mrf.mxu2  ;;  %v458_v40 = vpop.f32.mrf.mxu0 }
  0xc9   : > { %1506 = vst [vmem:[%s1726_s10 + $0x10] sm:$0xff] %v1438_v35   ;;  %v563_v41 = vpop.f32.mrf.mxu1  ;;  %v892_v42 = vadd.f32 %v821_v37, %v562_v38 }
  0xca   : > { %v564_v43 = vadd.f32 %v563_v41, %v458_v40 }
  0xcb   : > { %v928_v46 = vadd.f32 %v1709_v45, %v892_v42 }
  0xcd   : > { %v960_v52 = vmax.f32 %v928_v46, 0.0 }
  0xce   : > { %v1759_v26 = vpop.f32.mrf.mxu3 }
  0xd0   : > { %v823_v44 = vpop.f32.mrf.mxu2  ;;  %v461_v49 = vpop.f32.mrf.mxu0 }
  0xd1   : > { %v893_v48 = vadd.f32 %v823_v44, %v564_v43  ;;  %v566_v50 = vpop.f32.mrf.mxu1 }
  0xd2   : > { %v567_v58 = vadd.f32 %v566_v50, %v461_v49 }
  0xd3   : > { %v929_v51 = vadd.f32 %v1709_v45, %v893_v48 }
  0xd5   : > { %v961_v53 = vmax.f32 %v929_v51, 0.0 }
  0xd6   : > { %v606_v55 = vpop.f32.mrf.mxu3 }
  0xd7   : > { %v1443_v54 = vpack.c.bf16 %v961_v53, %v960_v52  ;;  %v1764_v56 = vadd.f32 %v606_v55, %v1704_v39 }
  0xd8   : > { %v826_v57 = vpop.f32.mrf.mxu2  ;;  %v463_v59 = vpop.f32.mrf.mxu0 }
  0xd9   : > { %1507 = vst [vmem:[%s1726_s10 + $0x18] sm:$0xff] %v1443_v54   ;;  %v568_v61 = vpop.f32.mrf.mxu1  ;;  %v894_v62 = vadd.f32 %v826_v57, %v567_v58 }
  0xda   : > { %v569_v63 = vadd.f32 %v568_v61, %v463_v59 }
  0xdb   : > { %v930_v2 = vadd.f32 %v1709_v45, %v894_v62 }
  0xdd   : > { %v962_v39 = vmax.f32 %v930_v2, 0.0 }
  0xde   : > { %v1767_v0 = vpop.f32.mrf.mxu3 }
  0xe0   : > { %v828_v1 = vpop.f32.mrf.mxu2  ;;  %v466_v5 = vpop.f32.mrf.mxu0 }
  0xe1   : > { %v895_v4 = vadd.f32 %v828_v1, %v569_v63  ;;  %v571_v6 = vpop.f32.mrf.mxu1 }
  0xe2   : > { %v572_v13 = vadd.f32 %v571_v6, %v466_v5 }
  0xe3   : > { %v931_v7 = vadd.f32 %v1709_v45, %v895_v4 }
  0xe5   : > { %v963_v8 = vmax.f32 %v931_v7, 0.0 }
  0xe6   : > { %v611_v10 = vpop.f32.mrf.mxu3 }
  0xe7   : > { %v1448_v9 = vpack.c.bf16 %v963_v8, %v962_v39  ;;  %v1772_v11 = vadd.f32 %v611_v10, %v1728_v60 }
  0xe8   : > { %v831_v12 = vpop.f32.mrf.mxu2  ;;  %v468_v14 = vpop.f32.mrf.mxu0 }
  0xe9   : > { %1508 = vst [vmem:[%s1726_s10 + $0x20] sm:$0xff] %v1448_v9   ;;  %v573_v15 = vpop.f32.mrf.mxu1  ;;  %v896_v17 = vadd.f32 %v831_v12, %v572_v13 }
  0xea   : > { %v574_v18 = vadd.f32 %v573_v15, %v468_v14  ;;  %v609_v15 = vadd.f32 %v1767_v0, %v1711_v47 }
  0xeb   : > { %v932_v21 = vadd.f32 %v1709_v45, %v896_v17 }
  0xed   : > { %v964_v60 = vmax.f32 %v932_v21, 0.0 }
  0xee   : > { %v1775_v19 = vpop.f32.mrf.mxu3 }
  0xf0   : > { %v833_v20 = vpop.f32.mrf.mxu2  ;;  %v471_v24 = vpop.f32.mrf.mxu0 }
  0xf1   : > { %v897_v22 = vadd.f32 %v833_v20, %v574_v18  ;;  %v576_v25 = vpop.f32.mrf.mxu1 }
  0xf2   : > { %v577_v33 = vadd.f32 %v576_v25, %v471_v24 }
  0xf3   : > { %v933_v27 = vadd.f32 %v1709_v45, %v897_v22 }
  0xf5   : > { %v965_v28 = vmax.f32 %v933_v27, 0.0 }
  0xf6   : > { %v616_v30 = vpop.f32.mrf.mxu3 }
  0xf7   : > { %v1453_v29 = vpack.c.bf16 %v965_v28, %v964_v60  ;;  %v1780_v31 = vadd.f32 %v616_v30, %v1742_v16 }
  0xf8   : > { %v836_v32 = vpop.f32.mrf.mxu2  ;;  %v473_v34 = vpop.f32.mrf.mxu0 }
  0xf9   : > { %1509 = vst [vmem:[%s1726_s10 + $0x28] sm:$0xff] %v1453_v29   ;;  %v578_v35 = vpop.f32.mrf.mxu1  ;;  %v898_v37 = vadd.f32 %v836_v32, %v577_v33 }
  0xfa   : > { %v579_v38 = vadd.f32 %v578_v35, %v473_v34 }
  0xfb   : > { %v934_v42 = vadd.f32 %v1709_v45, %v898_v37 }
  0xfd   : > { %v966_v16 = vmax.f32 %v934_v42, 0.0 }
  0xfe   : > { %v1783_v40 = vpop.f32.mrf.mxu3 }
 0x100   : > { %v838_v41 = vpop.f32.mrf.mxu2  ;;  %v476_v44 = vpop.f32.mrf.mxu0 }
 0x101   : > { %v899_v43 = vadd.f32 %v838_v41, %v579_v38  ;;  %v581_v46 = vpop.f32.mrf.mxu1 }
 0x102   : > { %v582_v54 = vadd.f32 %v581_v46, %v476_v44  ;;  %v614_v44 = vadd.f32 %v1775_v19, %v1731_v3 }
 0x103   : > { %v935_v48 = vadd.f32 %v1709_v45, %v899_v43 }
 0x105   : > { %v967_v49 = vmax.f32 %v935_v48, 0.0 }
 0x106   : > { %v621_v51 = vpop.f32.mrf.mxu3 }
 0x107   : > { %v1458_v50 = vpack.c.bf16 %v967_v49, %v966_v16  ;;  %v1788_v52 = vadd.f32 %v621_v51, %v1756_v36 }
 0x108   : > { %v841_v53 = vpop.f32.mrf.mxu2  ;;  %v478_v55 = vpop.f32.mrf.mxu0 }
 0x109   : > { %1510 = vst [vmem:[%s1726_s10 + $0x30] sm:$0xff] %v1458_v50   ;;  %v583_v57 = vpop.f32.mrf.mxu1  ;;  %v900_v58 = vadd.f32 %v841_v53, %v582_v54 }
 0x10a   : > { %v584_v59 = vadd.f32 %v583_v57, %v478_v55 }
 0x10b   : > { %v936_v63 = vadd.f32 %v1709_v45, %v900_v58 }
 0x10d   : > { %v968_v36 = vmax.f32 %v936_v63, 0.0 }
 0x10e   : > { %v1791_v61 = vpop.f32.mrf.mxu3 }
 0x110   : > { %v843_v62 = vpop.f32.mrf.mxu2  ;;  %v481_v2 = vpop.f32.mrf.mxu0 }
 0x111   : > { %v901_v1 = vadd.f32 %v843_v62, %v584_v59  ;;  %v586_v4 = vpop.f32.mrf.mxu1 }
 0x112   : > { %v587_v9 = vadd.f32 %v586_v4, %v481_v2 }
 0x113   : > { %v937_v5 = vadd.f32 %v1709_v45, %v901_v1 }
 0x115   : > { %v969_v6 = vmax.f32 %v937_v5, 0.0 }
 0x116   : > { %v866_v39 = vpop.f32.mrf.mxu3 }
 0x117   : > { %v1463_v7 = vpack.c.bf16 %v969_v6, %v968_v36  ;;  %v910_v13 = vadd.f32 %v866_v39, %v1764_v56  ;;  %v619_v39 = vadd.f32 %v1783_v40, %v1745_v23 }
 0x118   : > { %v846_v8 = vpop.f32.mrf.mxu2  ;;  %v483_v10 = vpop.f32.mrf.mxu0 }
 0x119   : > { %1511 = vst [vmem:[%s1726_s10 + $0x38] sm:$0xff] %v1463_v7   ;;  %v588_v12 = vpop.f32.mrf.mxu1  ;;  %v902_v14 = vadd.f32 %v846_v8, %v587_v9  ;;  %v946_v20 = vadd.f32 %v1709_v45, %v910_v13 }
 0x11a   : > { %v589_v17 = vadd.f32 %v588_v12, %v483_v10 }
 0x11b   : > { %v938_v24 = vadd.f32 %v1709_v45, %v902_v14  ;;  %v978_v29 = vmax.f32 %v946_v20, 0.0 }
 0x11d   : > { %v970_v47 = vmax.f32 %v938_v24, 0.0 }
 0x11e   : > { %v868_v18 = vpop.f32.mrf.mxu3 }
 0x11f   : > { %v911_v22 = vadd.f32 %v868_v18, %v609_v15 }
 0x120   : > { %v848_v21 = vpop.f32.mrf.mxu2  ;;  %v486_v27 = vpop.f32.mrf.mxu0 }
 0x121   : > { %v903_v25 = vadd.f32 %v848_v21, %v589_v17  ;;  %v947_v60 = vadd.f32 %v1709_v45, %v911_v22  ;;  %v591_v28 = vpop.f32.mrf.mxu1 }
 0x122   : > { %v592_v37 = vadd.f32 %v591_v28, %v486_v27 }
 0x123   : > { %v939_v56 = vadd.f32 %v1709_v45, %v903_v25  ;;  %v979_v30 = vmax.f32 %v947_v60, 0.0 }
 0x125   : > { %v971_v0 = vmax.f32 %v939_v56, 0.0  ;;  %v1488_v32 = vpack.c.bf16 %v979_v30, %v978_v29 }
 0x126   : > { %v871_v34 = vpop.f32.mrf.mxu3 }
 0x127   : > { %v1468_v33 = vpack.c.bf16 %v971_v0, %v970_v47  ;;  %1516 = vst [vmem:[%s1726_s10 + $0x60] sm:$0xff] %v1488_v32   ;;  %v912_v42 = vadd.f32 %v871_v34, %v1772_v11  ;;  %v624_v0 = vadd.f32 %v1791_v61, %v1759_v26 }
 0x128   : > { %v851_v35 = vpop.f32.mrf.mxu2  ;;  %v488_v38 = vpop.f32.mrf.mxu0 }
 0x129   : > { %1512 = vst [vmem:[%s1726_s10 + $0x40] sm:$0xff] %v1468_v33   ;;  %v593_v41 = vpop.f32.mrf.mxu1  ;;  %v904_v43 = vadd.f32 %v851_v35, %v592_v37  ;;  %v948_v16 = vadd.f32 %v1709_v45, %v912_v42 }
 0x12a   : > { %v594_v46 = vadd.f32 %v593_v41, %v488_v38 }
 0x12b   : > { %v940_v51 = vadd.f32 %v1709_v45, %v904_v43  ;;  %v980_v58 = vmax.f32 %v948_v16, 0.0 }
 0x12d   : > { %v972_v3 = vmax.f32 %v940_v51, 0.0 }
 0x12e   : > { %v873_v48 = vpop.f32.mrf.mxu3 }
 0x12f   : > { %v913_v50 = vadd.f32 %v873_v48, %v614_v44 }
 0x130   : > { %v853_v49 = vpop.f32.mrf.mxu2  ;;  %v491_v54 = vpop.f32.mrf.mxu0 }
 0x131   : > { %v905_v53 = vadd.f32 %v853_v49, %v594_v46  ;;  %v949_v55 = vadd.f32 %v1709_v45, %v913_v50  ;;  %v596_v57 = vpop.f32.mrf.mxu1 }
 0x132   : > { %v597_v4 = vadd.f32 %v596_v57, %v491_v54 }
 0x133   : > { %v941_v11 = vadd.f32 %v1709_v45, %v905_v53  ;;  %v981_v59 = vmax.f32 %v949_v55, 0.0 }
 0x135   : > { %v973_v19 = vmax.f32 %v941_v11, 0.0  ;;  %v1493_v62 = vpack.c.bf16 %v981_v59, %v980_v58 }
 0x136   : > { %v876_v1 = vpop.f32.mrf.mxu3 }
 0x137   : > { %v1473_v63 = vpack.c.bf16 %v973_v19, %v972_v3  ;;  %1517 = vst [vmem:[%s1726_s10 + $0x68] sm:$0xff] %v1493_v62   ;;  %v914_v6 = vadd.f32 %v876_v1, %v1780_v31 }
 0x138   : > { %v856_v2 = vpop.f32.mrf.mxu2  ;;  %v493_v5 = vpop.f32.mrf.mxu0 }
 0x139   : > { %1513 = vst [vmem:[%s1726_s10 + $0x48] sm:$0xff] %v1473_v63   ;;  %v598_v36 = vpop.f32.mrf.mxu1  ;;  %v906_v7 = vadd.f32 %v856_v2, %v597_v4  ;;  %v950_v10 = vadd.f32 %v1709_v45, %v914_v6 }
 0x13a   : > { %v599_v8 = vadd.f32 %v598_v36, %v493_v5 }
 0x13b   : > { %v942_v14 = vadd.f32 %v1709_v45, %v906_v7  ;;  %v982_v21 = vmax.f32 %v950_v10, 0.0 }
 0x13d   : > { %v974_v23 = vmax.f32 %v942_v14, 0.0 }
 0x13e   : > { %v878_v9 = vpop.f32.mrf.mxu3 }
 0x13f   : > { %v915_v13 = vadd.f32 %v878_v9, %v619_v39 }
 0x140   : > { %v858_v12 = vpop.f32.mrf.mxu2  ;;  %v496_v18 = vpop.f32.mrf.mxu0 }
 0x141   : > { %v907_v15 = vadd.f32 %v858_v12, %v599_v8  ;;  %v951_v17 = vadd.f32 %v1709_v45, %v915_v13  ;;  %v601_v20 = vpop.f32.mrf.mxu1 }
 0x142   : > { %v602_v28 = vadd.f32 %v601_v20, %v496_v18 }
 0x143   : > { %v943_v31 = vadd.f32 %v1709_v45, %v907_v15  ;;  %v983_v22 = vmax.f32 %v951_v17, 0.0 }
 0x145   : > { %v975_v40 = vmax.f32 %v943_v31, 0.0  ;;  %v1498_v24 = vpack.c.bf16 %v983_v22, %v982_v21 }
 0x146   : > { %v881_v27 = vpop.f32.mrf.mxu3 }
 0x147   : > { %v1478_v25 = vpack.c.bf16 %v975_v40, %v974_v23  ;;  %1518 = vst [vmem:[%s1726_s10 + $0x70] sm:$0xff] %v1498_v24   ;;  %v916_v56 = vadd.f32 %v881_v27, %v1788_v52 }
 0x148   : > { %v861_v60 = vpop.f32.mrf.mxu2  ;;  %v498_v29 = vpop.f32.mrf.mxu0 }
 0x149   : > { %1514 = vst [vmem:[%s1726_s10 + $0x50] sm:$0xff] %v1478_v25   ;;  %v603_v30 = vpop.f32.mrf.mxu1  ;;  %v908_v47 = vadd.f32 %v861_v60, %v602_v28  ;;  %v952_v34 = vadd.f32 %v1709_v45, %v916_v56 }
 0x14a   : > { %v604_v32 = vadd.f32 %v603_v30, %v498_v29 }
 0x14b   : > { %v944_v38 = vadd.f32 %v1709_v45, %v908_v47  ;;  %v984_v43 = vmax.f32 %v952_v34, 0.0 }
 0x14d   : > { %v976_v46 = vmax.f32 %v944_v38, 0.0 }
 0x14e   : > { %v883_v33 = vpop.f32.mrf.mxu3 }
 0x14f   : > { %v917_v37 = vadd.f32 %v883_v33, %v624_v0 }
 0x150   : > { %v863_v35 = vpop.f32.mrf.mxu2 }
 0x151   : > { %v909_v41 = vadd.f32 %v863_v35, %v604_v32  ;;  %v953_v42 = vadd.f32 %v1709_v45, %v917_v37 }
 0x153   : > { %v945_v52 = vadd.f32 %v1709_v45, %v909_v41  ;;  %v985_v44 = vmax.f32 %v953_v42, 0.0 }
 0x155   : > { %v977_v48 = vmax.f32 %v945_v52, 0.0  ;;  %v1503_v26 = vpack.c.bf16 %v985_v44, %v984_v43 }
 0x157   : > { %v1483_v61 = vpack.c.bf16 %v977_v48, %v976_v46  ;;  %1519 = vst [vmem:[%s1726_s10 + $0x78] sm:$0xff] %v1503_v26  }
 0x159   : > { %1515 = vst [vmem:[%s1726_s10 + $0x58] sm:$0xff] %v1483_v61  }
 0x15a PF: > { %s13_s14 = sadd.s32 1, %s1571_s14   ;;  %s1845_s12 = smov %s1567_s13 }
 0x15b   : > { %p10_p5 = scmp.ge.s32.totalorder %s13_s14, 4   ;;  %s1846_s13 = smov %s1848_s15 }
 0x15d   :  { %12 = sbr.rel (!%p10_p5) target bundleno = 2 (0x2), region = 70 }

</bundles_post_ra>
